<compile_context>
chip_gen: v7x
topology: tpu7x:2x2x1
jax: 0.10.0
libtpu: 0.0.40
codegen_flags: <defaults>
</compile_context>

<pallas_src>
import functools

import jax
import jax.numpy as jnp
from jax import lax
from jax.experimental import pallas as pl
from jax.experimental.pallas import tpu as pltpu

_MIB = 1024 * 1024


def _round_up(x, m):
    return ((x + m - 1) // m) * m


def _device_kind():
    try:
        return jax.devices()[0].device_kind.lower()
    except Exception:
        return ""


def _vmem_profile():
    """(tile_budget_bytes, vmem_limit_bytes, n_tensorcores) for this generation."""
    kind = _device_kind()
    if "v7" in kind or "7x" in kind:
        return 40 * _MIB, 48 * _MIB, 2      # 64 MiB physical VMEM, 2 TC / chip
    if any(g in kind for g in ("v4", "v5", "v6")):
        return 80 * _MIB, 96 * _MIB, 1      # 128 MiB physical VMEM
    return 24 * _MIB, 32 * _MIB, 1          # unknown target: stay conservative


def _choose_tf(F, max_tf, prefer_multi_tiles):
    """Feature (lane) tile: full-extent F or an exact divisor (multiple of 128)."""
    def largest_divisor(upper):
        t = (min(upper, F) // 128) * 128
        while t >= 128:
            if F % t == 0:
                return t
            t -= 128
        return None

    if F <= max_tf:
        if prefer_multi_tiles and F >= 256 and F % 128 == 0:
            t = largest_divisor(F // 2)     # >=2 lane-dense tiles (v7x megacore)
            if t is not None:
                return t
        return F
    t = largest_divisor(max_tf)
    return t if t is not None else F        # full-extent fallback; never pad F


def _choose_tn(budget, tb, tf, u_itemsize, v_itemsize, max_tn):
    """Node tile from the VMEM budget (v 3-buffered + u/out/acc/batch/one-hot)."""
    fixed = tb * tf * (4 * u_itemsize + 4)              # u(x2) + out(x2) + f32 acc
    per_node = 3 * tf * v_itemsize + 8 + tb * (4 + v_itemsize)
    tn = max(budget - fixed, 0) // per_node
    tn = min(int(tn), int(max_tn))
    return max(128, (tn // 128) * 128)


def _v_block_spec(tn, tf):
    index_map = lambda i, j, k: (k, j)
    buffered = getattr(pl, "Buffered", None)
    if buffered is not None:
        try:
            return pl.BlockSpec((tn, tf), index_map, pipeline_mode=buffered(3))
        except TypeError:
            pass
    return pl.BlockSpec((tn, tf), index_map)


# --------------------------------------------------------------------------- #
# Kernels
# --------------------------------------------------------------------------- #
def _segsum_add_kernel(batch_ref, u_ref, v_ref, o_ref, acc_ref, *,
                       n_nodes, tn, tb, mask_tail):
    # grid = (B tiles, F tiles, N tiles); N is the innermost reduction axis.
    # batch_ref: (1, tn) int32 node->graph index (sentinel >= B_pad in padding)
    # u_ref/o_ref: (tb, tf); v_ref: (tn, tf); acc_ref: (tb, tf) f32 scratch.
    i = pl.program_id(0)
    k = pl.program_id(2)

    @pl.when(k == 0)
    def _init():
        acc_ref[...] = jnp.zeros_like(acc_ref)

    v_t = v_ref[...]                                            # (tn, tf)
    if mask_tail:
        # v is unpadded in HBM: the last N tile reads past the end of v, and
        # that region of the VMEM block is unspecified (can hold NaN/Inf).
        # Zero it with an explicit select so 0 * NaN never hits the accumulator.
        node_ids = k * tn + lax.broadcasted_iota(jnp.int32, (tn, 1), 0)
        v_t = jnp.where(node_ids < n_nodes, v_t, jnp.zeros_like(v_t))

    seg = batch_ref[...]                                        # (1, tn) int32
    row_ids = i * tb + lax.broadcasted_iota(jnp.int32, (tb, tn), 0)
    # Compare in int32 on the VPU; single cast to v's dtype (0/1 exact in bf16)
    # so the MXU runs at its native rate for bf16 inputs.
    one_hot = (row_ids == seg).astype(v_t.dtype)                # (tb, tn)

    # segment-sum tile on the MXU: (tb, tn) @ (tn, tf) with f32 accumulation.
    acc_ref[...] += jnp.dot(one_hot, v_t, preferred_element_type=jnp.float32)

    @pl.when(k == pl.num_programs(2) - 1)
    def _finalize():
        o_ref[...] = (u_ref[...].astype(jnp.float32)
                      + acc_ref[...]).astype(o_ref.dtype)


def _segsum_add_single_kernel(batch_ref, u_ref, v_ref, o_ref, *, tb):
    # Single N tile (N fits VMEM): no scratch, no init/finalize, no masking.
    i = pl.program_id(0)
    seg = batch_ref[...]                                        # (1, N)
    n = seg.shape[1]
    row_ids = i * tb + lax.broadcasted_iota(jnp.int32, (tb, n), 0)
    one_hot = (row_ids == seg).astype(v_ref.dtype)
    acc = jnp.dot(one_hot, v_ref[...], preferred_element_type=jnp.float32)
    o_ref[...] = (u_ref[...].astype(jnp.float32) + acc).astype(o_ref.dtype)


# --------------------------------------------------------------------------- #
# Wrapper
# --------------------------------------------------------------------------- #
def graph_model_forward(u, v, batch, *, max_tn=8192, max_tf=1024, max_tb=256,
                        split_f_for_megacore=None):
    """u: [B, F], v: [N, F], batch: [N] int  ->  u + segment_sum(v, batch, B).

    For a truly in-place "u +=", donate u at the enclosing jit
    (donate_argnums); the output aliases u's buffer via input_output_aliases.
    """
    B, F = u.shape
    N, Fv = v.shape
    assert F == Fv and batch.shape == (N,)
    out_dtype = u.dtype

    budget, vmem_limit, n_cores = _vmem_profile()
    if split_f_for_megacore is None:
        split_f_for_megacore = n_cores >= 2

    # ---- B (graph / output-row) tiling: only pads u when B is large. -------
    max_tb = max(8, (max_tb // 8) * 8)
    if B <= max_tb:
        tb, B_pad, u_p = B, B, u
    else:
        tb = max_tb
        B_pad = _round_up(B, tb)
        u_p = jnp.pad(u, ((0, B_pad - B), (0, 0)))
    nb = B_pad // tb

    # ---- F (lane) tiling: full-extent or exact divisor; F is never padded. -
    tf = _choose_tf(F, max_tf, split_f_for_megacore)
    nf = F // tf

    # ---- N (node, reduction) tiling: v is never padded or copied. ----------
    v_itemsize = jnp.dtype(v.dtype).itemsize
    u_itemsize = jnp.dtype(out_dtype).itemsize
    tn_cap = _choose_tn(budget, tb, tf, u_itemsize, v_itemsize, max_tn)

    batch_i32 = batch.astype(jnp.int32)

    if N <= tn_cap:
        # ---------------- fast path: single N tile --------------------------
        batch2d = batch_i32.reshape(1, N)
        kernel = functools.partial(_segsum_add_single_kernel, tb=tb)
        out = pl.pallas_call(
            kernel,
            out_shape=jax.ShapeDtypeStruct((B_pad, F), out_dtype),
            grid_spec=pltpu.PrefetchScalarGridSpec(
                num_scalar_prefetch=0,
                grid=(nb, nf),
                in_specs=[
                    pl.BlockSpec((1, N), lambda i, j: (0, 0)),     # batch
                    pl.BlockSpec((tb, tf), lambda i, j: (i, j)),   # u
                    pl.BlockSpec((N, tf), lambda i, j: (0, j)),    # v (full N)
                ],
                out_specs=pl.BlockSpec((tb, tf), lambda i, j: (i, j)),
            ),
            compiler_params=pltpu.CompilerParams(
                dimension_semantics=("parallel", "parallel"),
                vmem_limit_bytes=vmem_limit),
            input_output_aliases={1: 0},                # in-place "u +=" intent
            cost_estimate=pl.CostEstimate(
                flops=2 * B_pad * N * F, transcendentals=0,
                bytes_accessed=(nb * N * F * v_itemsize
                                + 2 * B_pad * F * u_itemsize + 4 * N)),
        )(batch2d, u_p, v)
    else:
        # ---------------- general path: tiled N reduction -------------------
        tn = tn_cap
        nk = -(-N // tn)                                 # cdiv
        # Pad only the (tiny) index vector; sentinel B_pad matches no output
        # row, so padded index slots contribute exactly zero.
        batch2d = jnp.pad(batch_i32, (0, nk * tn - N),
                          constant_values=B_pad).reshape(1, nk * tn)
        mask_tail = (N % tn) != 0
        kernel = functools.partial(_segsum_add_kernel, n_nodes=N, tn=tn, tb=tb,
                                   mask_tail=mask_tail)
        out = pl.pallas_call(
            kernel,
            out_shape=jax.ShapeDtypeStruct((B_pad, F), out_dtype),
            grid_spec=pltpu.PrefetchScalarGridSpec(
                num_scalar_prefetch=0,
                grid=(nb, nf, nk),                       # reduction axis last
                in_specs=[
                    pl.BlockSpec((1, tn), lambda i, j, k: (0, k)),   # batch
                    pl.BlockSpec((tb, tf), lambda i, j, k: (i, j)),  # u
                    _v_block_spec(tn, tf),                           # v (3-buffered)
                ],
                out_specs=pl.BlockSpec((tb, tf), lambda i, j, k: (i, j)),
                scratch_shapes=[pltpu.VMEM((tb, tf), jnp.float32)],
            ),
            compiler_params=pltpu.CompilerParams(
                dimension_semantics=("parallel", "parallel", "arbitrary"),
                vmem_limit_bytes=vmem_limit),
            input_output_aliases={1: 0},                 # in-place "u +=" intent
            cost_estimate=pl.CostEstimate(
                flops=2 * B_pad * nk * tn * F, transcendentals=0,
                bytes_accessed=(nb * N * F * v_itemsize
                                + 2 * B_pad * F * u_itemsize + 4 * nk * tn)),
        )(batch2d, u_p, v)

    return out if B_pad == B else out[:B]


def _reference(u, v, batch):
    B = u.shape[0]
    return u + jax.ops.segment_sum(v, batch, num_segments=B)


if __name__ == "__main__":
    key = jax.random.PRNGKey(0)
    k1, k2, k3 = jax.random.split(key, 3)

    # ---- Test 1: small shapes, single-N-tile fast path ----------------------
    B, N, F = 8, 16, 128
    u = jax.random.normal(k1, (B, F), dtype=jnp.float32)
    v = jax.random.normal(k2, (N, F), dtype=jnp.float32)
    batch = jax.random.randint(k3, (N,), 0, B, dtype=jnp.int32)
    ref = _reference(u, v, batch)
    out = jax.block_until_ready(graph_model_forward(u, v, batch))
    assert out.shape == (B, F)
    assert jnp.allclose(out, ref, atol=1e-5, rtol=1e-5), "fast path mismatch"

    # ---- Test 2: tiled N reduction with ragged (masked) last tile ----------
    B2, N2, F2 = 8, 300, 128
    u2 = jax.random.normal(k1, (B2, F2), dtype=jnp.float32)
    v2 = jax.random.normal(k2, (N2, F2), dtype=jnp.float32)
    b2 = jax.random.randint(k3, (N2,), 0, B2, dtype=jnp.int32)
    ref2 = _reference(u2, v2, b2)
    out2 = jax.block_until_ready(graph_model_forward(u2, v2, b2, max_tn=128))
    assert out2.shape == (B2, F2)
    assert jnp.allclose(out2, ref2, atol=1e-4, rtol=1e-4), "tiled-N mismatch"

    # ---- Test 3: B tiling + F split + ragged N (full 3-D grid) -------------
    B3, N3, F3 = 16, 300, 256
    u3 = jax.random.normal(k1, (B3, F3), dtype=jnp.float32)
    v3 = jax.random.normal(k2, (N3, F3), dtype=jnp.float32)
    b3 = jax.random.randint(k3, (N3,), 0, B3, dtype=jnp.int32)
    ref3 = _reference(u3, v3, b3)
    out3 = jax.block_until_ready(
        graph_model_forward(u3, v3, b3, max_tn=128, max_tb=8,
                            split_f_for_megacore=True))
    assert out3.shape == (B3, F3)
    assert jnp.allclose(out3, ref3, atol=1e-4, rtol=1e-4), "B/F-tiled mismatch"

    # ---- Test 4: bf16 inputs (f32 accumulation inside the kernel) ----------
    B4, N4, F4 = 8, 64, 128
    u4 = jax.random.normal(k1, (B4, F4), dtype=jnp.float32).astype(jnp.bfloat16)
    v4 = jax.random.normal(k2, (N4, F4), dtype=jnp.float32).astype(jnp.bfloat16)
    b4 = jax.random.randint(k3, (N4,), 0, B4, dtype=jnp.int32)
    ref4 = (u4.astype(jnp.float32)
            + jax.ops.segment_sum(v4.astype(jnp.float32), b4, num_segments=B4))
    out4 = jax.block_until_ready(graph_model_forward(u4, v4, b4))
    assert out4.dtype == jnp.bfloat16 and out4.shape == (B4, F4)
    assert jnp.allclose(out4.astype(jnp.float32), ref4, atol=5e-2, rtol=5e-2), \
        "bf16 mismatch"

    print("KERNEL_OK")
</pallas_src>

<mosaic_0001>
module attributes {stable_mosaic.version = 11 : i64} {
  func.func @_segsum_add_single_kernel(%arg0: i32, %arg1: i32, %arg2: memref<1x16xi32, #tpu.memory_space<vmem>>, %arg3: memref<8x128xf32, #tpu.memory_space<vmem>>, %arg4: memref<16x128xf32, #tpu.memory_space<vmem>>, %arg5: memref<8x128xf32, #tpu.memory_space<vmem>>) attributes {dimension_semantics = [#tpu.dimension_semantics<parallel>, #tpu.dimension_semantics<parallel>], iteration_bounds = array<i64: 1, 1>, scalar_prefetch = 0 : i64, scratch_operands = 0 : i64, tpu.core_type = #tpu.core_type<tc>, window_params = [{pipeline_mode = #tpu.pipeline_mode<synchronous>, transform_indices = @transform_0, window_bounds = array<i64: 1, 16>}, {transform_indices = @transform_1, window_bounds = array<i64: 8, 128>}, {transform_indices = @transform_2, window_bounds = array<i64: 16, 128>}, {transform_indices = @transform_3, window_bounds = array<i64: 8, 128>}]} {
    %c0 = arith.constant 0 : index
    %c0_0 = arith.constant 0 : index
    %0 = vector.load %arg2[%c0, %c0_0] : memref<1x16xi32, #tpu.memory_space<vmem>>, vector<1x16xi32>
    %c8_i32 = arith.constant 8 : i32
    %1 = arith.muli %arg0, %c8_i32 : i32
    %2 = tpu.iota {dimensions = array<i32: 0>} : vector<8x16xi32>
    %3 = vector.broadcast %1 : i32 to vector<8x16xi32>
    %4 = arith.addi %3, %2 : vector<8x16xi32>
    %5 = vector.broadcast %0 : vector<1x16xi32> to vector<8x16xi32>
    %6 = arith.cmpi eq, %4, %5 : vector<8x16xi32>
    %7 = arith.extui %6 : vector<8x16xi1> to vector<8x16xi32>
    %8 = arith.sitofp %7 : vector<8x16xi32> to vector<8x16xf32>
    %c0_1 = arith.constant 0 : index
    %c0_2 = arith.constant 0 : index
    %9 = vector.load %arg4[%c0_1, %c0_2] : memref<16x128xf32, #tpu.memory_space<vmem>>, vector<16x128xf32>
    %cst = arith.constant dense<0.000000e+00> : vector<8x128xf32>
    %10 = tpu.matmul %8, %9, %cst {dimension_numbers = #tpu.dot_dimension_numbers<[1], [0], [0], [1], [0, 0, 1, 1], [], []>} : vector<8x16xf32>, vector<16x128xf32>, vector<8x128xf32> -> vector<8x128xf32>
    %c0_3 = arith.constant 0 : index
    %c0_4 = arith.constant 0 : index
    %11 = vector.load %arg3[%c0_3, %c0_4] : memref<8x128xf32, #tpu.memory_space<vmem>>, vector<8x128xf32>
    %12 = arith.addf %11, %10 : vector<8x128xf32>
    %c0_5 = arith.constant 0 : index
    %c0_6 = arith.constant 0 : index
    %13 = vector.load %arg5[%c0_5, %c0_6] : memref<8x128xf32, #tpu.memory_space<vmem>>, vector<8x128xf32>
    tpu.vector_store %arg5[%c0_5, %c0_6], %12 {strides = array<i32>} : memref<8x128xf32, #tpu.memory_space<vmem>>, vector<8x128xf32>,
    return
  }
  func.func @transform_0(%arg0: i32, %arg1: i32) -> (i32, i32) {
    %c0_i32 = arith.constant 0 : i32
    %c0_i32_0 = arith.constant 0 : i32
    %c0_i32_1 = arith.constant 0 : i32
    return %c0_i32, %c0_i32_0 : i32, i32
  }
  func.func @transform_1(%arg0: i32, %arg1: i32) -> (i32, i32) {
    %c0_i32 = arith.constant 0 : i32
    return %arg0, %arg1 : i32, i32
  }
  func.func @transform_2(%arg0: i32, %arg1: i32) -> (i32, i32) {
    %c0_i32 = arith.constant 0 : i32
    %c0_i32_0 = arith.constant 0 : i32
    return %c0_i32, %arg1 : i32, i32
  }
  func.func @transform_3(%arg0: i32, %arg1: i32) -> (i32, i32) {
    %c0_i32 = arith.constant 0 : i32
    return %arg0, %arg1 : i32, i32
  }
}

</mosaic_0001>

<bundles_post_ra>
// kernel: tpu_custom_call.1
= control target key start
LH: loop header
LB: loop body
LE: loop exit
PB: predicated region body
PF: predicated region fallthrough
CT: control target
= control target key end

     0   :  { %8 = vsyncpa [#allocation3], 0  ;;  %s261_s0 = inlined_call_operand.vmem [shape: s32[1,16], index: 0, kind: input, shape index: {}]   ;;  %s262_s1 = inlined_call_operand.hbm [shape: f32[8,128], index: 1, kind: input, shape index: {}, may-alias: {1,3}]   ;;  %s263_s2 = inlined_call_operand.vmem [shape: f32[16,128], index: 2, kind: input, shape index: {}]   ;;  %s264_s3 = inlined_call_operand.hbm [shape: f32[8,128], index: 3, kind: output, shape index: {}, may-alias: {1,3}]  }
   0x1   :  { %9 = vsyncpa [#allocation4], 0  ;;  %s203_s12 = smov [#allocation2]   ;;  %s155_s16 = scalar_lea.hbm %s262_s1, 128 }
   0x2   :  { %s18_s13 = sshll.u32 %s203_s12, 4  ;;  %p156_p0 = scmp.ne.s32.totalorder %s262_s1, %s155_s16  ;;  %s19_s13 = int_to_ptr.vmem [resolvable:$true] %s18_s13 }
   0x3   :  { %p159_p1 = scmp.lt.u32.totalorder %s155_s16, %s262_s1 }
   0x5   :  { %p161_p2 = pnand %p159_p1, %p156_p0 }
   0x7   :  { %164 = shalt.err (!%p161_p2)
}
   0x8   :  { %s165_s21 = scalar_lea.vmem %s19_s13, 128  ;;  %p170_p4 = scmp.lt.s32.totalorder %s19_s13, %s19_s13 }
   0x9   :  { %p166_p3 = scmp.ne.s32.totalorder %s19_s13, %s165_s21  ;;  %p171_p5 = scmp.lt.s32.totalorder %s165_s21, %s165_s21 }
   0xb   :  { %p172_p6 = por %p171_p5, %p170_p4 }
   0xd   :  { %p173_p7 = pnand %p172_p6, %p166_p3 }
   0xf   :  { %176 = shalt.err (!%p173_p7)
}
  0x10   :  { %21 = dma.hbm_to_vmem [thread:$0]  %s262_s1, 128, %s19_s13, [#allocation3]  }
  0x11   :  { %199 = dma.done.wait [#allocation3], 128  }
  0x12   :  { %200 = vsyncadd [#allocation3], 4294967168  ;;  %v29_v0 = vlaneseq  ;;  %v204_v1 = vmov 0.0|0.0   ;;  %vm205_vm0 = vmmov 0   ;;  %v206_v2 = vmov 0.0   ;;  %v40_v4 = vld [vmem:[%s263_s2] sm:$0xff] }
  0x13   :  { %147 = vmatprep.subr.bf16.mxu0 %v204_v1  ;;  %144 = vmatprep.mubr.msk.f32.mxu0 %vm205_vm0, %v206_v2  ;;  %v41_v5 = vld [vmem:[%s263_s2 + $0x8] sm:$0xff]  ;;  %v134_v6 = vld [vmem:[%s261_s0] ss:$0 sm:$0xff]  ;;  %vm42_vm2 = vcmask 130048   ;;  %s207_s1 = smov [#allocation5]  }
  0x14   :  { %v30_v3 = vshrl.u32 %v29_v0, 7  ;;  %v148_v7 = vpack.c.bf16 %v41_v5, %v40_v4  ;;  %v116_v9 = vld [vmem:[#allocation2] sm:$0xff]  ;;  %s125_s30 = sshll.u32 %s207_s1, 4  ;;  %s126_s30 = int_to_ptr.vmem [resolvable:$true] %s125_s30 }
  0x15   :  { %s177_s4 = scalar_lea.vmem %s126_s30, 128  ;;  %p182_p9 = scmp.lt.s32.totalorder %s126_s30, %s126_s30 }
  0x16   :  { %vm37_vm1 = vcmp.eq.s32.totalorder %v30_v3, %v134_v6  ;;  %149 = vmatpush3.bf16.msra.mxu0 %v148_v7  ;;  %p178_p8 = scmp.ne.s32.totalorder %s126_s30, %s177_s4  ;;  %p183_p10 = scmp.lt.s32.totalorder %s177_s4, %s177_s4 }
  0x17   :  { %v135_v8 = vsel %vm37_vm1, 1.0, %v206_v2 }
  0x18   :  { %p184_p11 = por %p183_p10, %p182_p9 }
  0x19   :  { %145 = vmatmul.mubr.msk.f32.vlgmr.msra.gmra.mrb[0].mxu0 %vm42_vm2, %v135_v8 }
  0x1a   :  { %p185_p12 = pnand %p184_p11, %p178_p8 }
  0xec   :  { %v112_v10 = vpop.f32.mrb[0].mxu0 }
  0xed   :  { %v117_v11 = vadd.f32 %v116_v9, %v112_v10  ;;  %v146_v12 = vpop.f32.mrb[1].mxu0 }
  0xef   :  { %118 = vst [vmem:[#allocation5] sm:$0xff] %v117_v11 }
  0xf0   :  { %188 = shalt.err (!%p185_p12)
}
  0xf1   :  { %s189_s5 = scalar_lea.hbm %s264_s3, 128 }
  0xf2   :  { %p190_p13 = scmp.ne.s32.totalorder %s264_s3, %s189_s5  ;;  %p193_p0 = scmp.lt.u32.totalorder %s189_s5, %s264_s3 }
  0xf4   :  { %p195_p1 = pnand %p193_p0, %p190_p13 }
  0xf6   :  { %198 = shalt.err (!%p195_p1)
}
  0xf7   :  { %128 = dma.vmem_to_hbm [thread:$0]  %s126_s30, 128, %s264_s3, [#allocation4]  }
  0xf8   :  { %201 = dma.done.wait [#allocation4], 128  }
  0xf9   :  { %202 = vsyncadd [#allocation4], 4294967168 }
  0xfa   :  { %132 = vsyncpa [#allocation3], 1 }
  0xfb   :  { %133 = vsyncpa [#allocation4], 1 }

</bundles_post_ra>
